<compile_context>
chip_gen: v5e
topology: v5e:2x2
jax: 0.10.0
libtpu: 0.0.40
codegen_flags: <defaults>
</compile_context>

<pallas_src>
import jax
import jax.numpy as jnp
from jax.experimental import pallas as pl
from jax.experimental.pallas import tpu as pltpu

_LANE = 128
_SUBLANE = 8


def _dcn_cross_kernel(x0_ref, xl_ref, w_ref, b_ref, o_ref):
    # x0_ref, xl_ref, o_ref : (TB, D)    w_ref, b_ref : (1, D)
    xl = xl_ref[...].astype(jnp.float32)
    x0 = x0_ref[...].astype(jnp.float32)
    w = w_ref[...].astype(jnp.float32)   # (1, D), broadcast over rows
    b = b_ref[...].astype(jnp.float32)   # (1, D)
    # (X_l @ w) per-row scalar: VPU elementwise mul + XLU lane reduction.
    s = jnp.sum(xl * w, axis=-1, keepdims=True)          # (TB, 1), f32
    o_ref[...] = (s * x0 + (xl + b)).astype(o_ref.dtype)


def _round_up(x, m):
    return ((x + m - 1) // m) * m


def _pick_batch_tile(d, itemsize,
                     vmem_budget_bytes=12 * 1024 * 1024, max_tile=1024):
    """Largest multiple-of-8 row tile such that ~6 live row blocks
    (double-buffered x0 / xl / out tiles) fit the VMEM budget."""
    lanes = _round_up(max(d, 1), _LANE)          # VMEM layout pads the lane dim
    per_row_bytes = 6 * lanes * itemsize
    tile = min(max_tile, max(_SUBLANE, vmem_budget_bytes // per_row_bytes))
    tile = max(_SUBLANE, (tile // _SUBLANE) * _SUBLANE)
    return tile


def dcn_cross_layer(x0, x_l, weight, bias, *, batch_tile=None):
    """x0, x_l: (B, D); weight: (D,); bias: (D,). Returns (B, D)."""
    B, D = x0.shape
    assert x_l.shape == (B, D)
    dtype = x0.dtype
    itemsize = jnp.dtype(dtype).itemsize

    if batch_tile is None:
        batch_tile = _pick_batch_tile(D, itemsize)
    batch_tile = max(_SUBLANE, (batch_tile // _SUBLANE) * _SUBLANE)
    if batch_tile >= B:
        # Single block spanning the whole batch (full-extent dims are always
        # legal block dims, even if B is not a multiple of 8).
        batch_tile = B

    grid = (pl.cdiv(B, batch_tile),)

    w2 = weight.reshape(1, D)
    b2 = bias.reshape(1, D)

    # TODO(synk): if D is ever huge (a single (batch_tile, D) block no longer
    # fits VMEM), add a second "arbitrary" grid axis over D with a VMEM
    # scratch accumulator for the per-row dot.
    out = pl.pallas_call(
        _dcn_cross_kernel,
        out_shape=jax.ShapeDtypeStruct((B, D), dtype),
        grid_spec=pltpu.PrefetchScalarGridSpec(
            num_scalar_prefetch=0,
            grid=grid,
            in_specs=[
                pl.BlockSpec((batch_tile, D), lambda i: (i, 0)),  # X0 tile
                pl.BlockSpec((batch_tile, D), lambda i: (i, 0)),  # X_l tile
                pl.BlockSpec((1, D), lambda i: (0, 0)),           # weight row
                pl.BlockSpec((1, D), lambda i: (0, 0)),           # bias row
            ],
            out_specs=pl.BlockSpec((batch_tile, D), lambda i: (i, 0)),
        ),
        compiler_params=pltpu.CompilerParams(
            dimension_semantics=("parallel",),
        ),
        cost_estimate=pl.CostEstimate(
            flops=5 * B * D,
            transcendentals=0,
            bytes_accessed=(3 * B * D + 2 * D) * itemsize,
        ),
    )(x0, x_l, w2, b2)
    return out


def dcn_cross_layer_ref(x0, x_l, weight, bias):
    s = x_l @ weight.reshape(-1, 1)      # (B, 1)
    return s * x0 + bias + x_l


if __name__ == "__main__":
    key = jax.random.PRNGKey(0)
    k1, k2, k3, k4, k5 = jax.random.split(key, 5)

    # Case 1: aligned shapes, forced small tile -> real multi-step grid
    # (exercises BlockSpec double-buffering across grid steps).
    B, D = 32, 128
    x0 = jax.random.normal(k1, (B, D), dtype=jnp.float32)
    x_l = jax.random.normal(k2, (B, D), dtype=jnp.float32)
    weight = jax.random.uniform(k3, (D,), dtype=jnp.float32,
                                minval=-(1.0 / D ** 0.5), maxval=1.0 / D ** 0.5)
    bias = jnp.zeros((D,), dtype=jnp.float32)

    out = dcn_cross_layer(x0, x_l, weight, bias, batch_tile=8)
    jax.block_until_ready(out)
    ref = dcn_cross_layer_ref(x0, x_l, weight, bias)
    assert out.shape == (B, D)
    assert jnp.allclose(out, ref, atol=1e-5, rtol=1e-5)

    # Case 2: ragged batch + non-128-multiple feature dim + multi-step grid
    # (exercises the partial-last-block path with no wrapper-side padding).
    B2, D2 = 20, 200
    x0b = jax.random.normal(k4, (B2, D2), dtype=jnp.float32)
    xlb = jax.random.normal(k5, (B2, D2), dtype=jnp.float32)
    w2 = jax.random.uniform(k3, (D2,), dtype=jnp.float32,
                            minval=-(1.0 / D2 ** 0.5), maxval=1.0 / D2 ** 0.5)
    b2 = jax.random.normal(k1, (D2,), dtype=jnp.float32)

    out2 = dcn_cross_layer(x0b, xlb, w2, b2, batch_tile=8)
    jax.block_until_ready(out2)
    ref2 = dcn_cross_layer_ref(x0b, xlb, w2, b2)
    assert out2.shape == (B2, D2)
    assert jnp.allclose(out2, ref2, atol=1e-5, rtol=1e-5)

    # Case 3: tiny batch (< 8 rows) + small feature dim, default tiling
    # (single full-extent block, no padding anywhere).
    B3, D3 = 2, 40
    x0c = jax.random.normal(k2, (B3, D3), dtype=jnp.float32)
    xlc = jax.random.normal(k5, (B3, D3), dtype=jnp.float32)
    w3 = jax.random.uniform(k4, (D3,), dtype=jnp.float32,
                            minval=-(1.0 / D3 ** 0.5), maxval=1.0 / D3 ** 0.5)
    b3 = jax.random.normal(k3, (D3,), dtype=jnp.float32)

    out3 = dcn_cross_layer(x0c, xlc, w3, b3)
    jax.block_until_ready(out3)
    ref3 = dcn_cross_layer_ref(x0c, xlc, w3, b3)
    assert out3.shape == (B3, D3)
    assert jnp.allclose(out3, ref3, atol=1e-5, rtol=1e-5)

    print("KERNEL_OK")
</pallas_src>

<mosaic_0001>
module attributes {stable_mosaic.version = 11 : i64} {
  func.func @_dcn_cross_kernel(%arg0: i32, %arg1: memref<8x128xf32, #tpu.memory_space<vmem>>, %arg2: memref<8x128xf32, #tpu.memory_space<vmem>>, %arg3: memref<1x128xf32, #tpu.memory_space<vmem>>, %arg4: memref<1x128xf32, #tpu.memory_space<vmem>>, %arg5: memref<8x128xf32, #tpu.memory_space<vmem>>) attributes {dimension_semantics = [#tpu.dimension_semantics<parallel>], iteration_bounds = array<i64: 4>, scalar_prefetch = 0 : i64, scratch_operands = 0 : i64, tpu.core_type = #tpu.core_type<tc>, window_params = [{transform_indices = @transform_0, window_bounds = array<i64: 8, 128>}, {transform_indices = @transform_1, window_bounds = array<i64: 8, 128>}, {pipeline_mode = #tpu.pipeline_mode<synchronous>, transform_indices = @transform_2, window_bounds = array<i64: 1, 128>}, {pipeline_mode = #tpu.pipeline_mode<synchronous>, transform_indices = @transform_3, window_bounds = array<i64: 1, 128>}, {transform_indices = @transform_4, window_bounds = array<i64: 8, 128>}]} {
    %c0 = arith.constant 0 : index
    %c0_0 = arith.constant 0 : index
    %0 = vector.load %arg2[%c0, %c0_0] : memref<8x128xf32, #tpu.memory_space<vmem>>, vector<8x128xf32>
    %c0_1 = arith.constant 0 : index
    %c0_2 = arith.constant 0 : index
    %1 = vector.load %arg1[%c0_1, %c0_2] : memref<8x128xf32, #tpu.memory_space<vmem>>, vector<8x128xf32>
    %c0_3 = arith.constant 0 : index
    %c0_4 = arith.constant 0 : index
    %2 = vector.load %arg3[%c0_3, %c0_4] : memref<1x128xf32, #tpu.memory_space<vmem>>, vector<1x128xf32>
    %c0_5 = arith.constant 0 : index
    %c0_6 = arith.constant 0 : index
    %3 = vector.load %arg4[%c0_5, %c0_6] : memref<1x128xf32, #tpu.memory_space<vmem>>, vector<1x128xf32>
    %4 = vector.broadcast %2 : vector<1x128xf32> to vector<8x128xf32>
    %5 = arith.mulf %0, %4 : vector<8x128xf32>
    %cst = arith.constant dense<0.000000e+00> : vector<8xf32>
    %6 = vector.multi_reduction <add>, %5, %cst [1] : vector<8x128xf32> to vector<8xf32>
    %7 = vector.shape_cast %6 : vector<8xf32> to vector<8x1xf32>
    %8 = vector.broadcast %7 : vector<8x1xf32> to vector<8x128xf32>
    %9 = arith.mulf %8, %1 : vector<8x128xf32>
    %10 = vector.broadcast %3 : vector<1x128xf32> to vector<8x128xf32>
    %11 = arith.addf %0, %10 : vector<8x128xf32>
    %12 = arith.addf %9, %11 : vector<8x128xf32>
    %c0_7 = arith.constant 0 : index
    %c0_8 = arith.constant 0 : index
    %13 = vector.load %arg5[%c0_7, %c0_8] : memref<8x128xf32, #tpu.memory_space<vmem>>, vector<8x128xf32>
    tpu.vector_store %arg5[%c0_7, %c0_8], %12 {strides = array<i32>} : memref<8x128xf32, #tpu.memory_space<vmem>>, vector<8x128xf32>,
    return
  }
  func.func @transform_0(%arg0: i32) -> (i32, i32) {
    %c0_i32 = arith.constant 0 : i32
    %c0_i32_0 = arith.constant 0 : i32
    return %arg0, %c0_i32 : i32, i32
  }
  func.func @transform_1(%arg0: i32) -> (i32, i32) {
    %c0_i32 = arith.constant 0 : i32
    %c0_i32_0 = arith.constant 0 : i32
    return %arg0, %c0_i32 : i32, i32
  }
  func.func @transform_2(%arg0: i32) -> (i32, i32) {
    %c0_i32 = arith.constant 0 : i32
    %c0_i32_0 = arith.constant 0 : i32
    %c0_i32_1 = arith.constant 0 : i32
    return %c0_i32, %c0_i32_0 : i32, i32
  }
  func.func @transform_3(%arg0: i32) -> (i32, i32) {
    %c0_i32 = arith.constant 0 : i32
    %c0_i32_0 = arith.constant 0 : i32
    %c0_i32_1 = arith.constant 0 : i32
    return %c0_i32, %c0_i32_0 : i32, i32
  }
  func.func @transform_4(%arg0: i32) -> (i32, i32) {
    %c0_i32 = arith.constant 0 : i32
    %c0_i32_0 = arith.constant 0 : i32
    return %arg0, %c0_i32 : i32, i32
  }
}

</mosaic_0001>

<bundles_post_ra>
// kernel: tpu_custom_call.1
= control target key start
LH: loop header
LB: loop body
LE: loop exit
PB: predicated region body
PF: predicated region fallthrough
CT: control target
= control target key end

     0   :  { %s769_s0 = inlined_call_operand.hbm [shape: f32[32,128], index: 0, kind: input, shape index: {}]   ;;  %s770_s1 = inlined_call_operand.hbm [shape: f32[32,128], index: 1, kind: input, shape index: {}]   ;;  %s771_s2 = inlined_call_operand.vmem [shape: f32[1,128], index: 2, kind: input, shape index: {}]   ;;  %s772_s3 = inlined_call_operand.vmem [shape: f32[1,128], index: 3, kind: input, shape index: {}]   ;;  %s773_s4 = inlined_call_operand.hbm [shape: f32[32,128], index: 4, kind: output, shape index: {}]  }
   0x1   :  { %774 = sst [smem:[#allocation11_spill]] %s769_s0 }
   0x2   :  { %9 = vsyncpa [#allocation3], 0 }
   0x3   :  { %11 = vsyncpa [#allocation3 + $0x1], 0 }
   0x4   :  { %12 = vsyncpa [#allocation6], 0 }
   0x5   :  { %14 = vsyncpa [#allocation6 + $0x1], 0 }
   0x6   :  { %15 = vsyncpa [#allocation4], 0 }
   0x7   :  { %17 = vsyncpa [#allocation4 + $0x1], 0  ;;  %s605_s15 = smov 0   ;;  %s607_s16 = smov 0  }
   0x8   :  { %s609_s17 = smov 0   ;;  %s611_s18 = smov 0  }
   0x9 LB: > { %s626_s19 = sadd.s32 4294967295, %s578_s18   ;;  %s380_s20 = sadd.s32 4294967294, %s578_s18   ;;  %s578_s18 = sphi %s611_s18, %s785_s18   ;;  %s574_s17 = sphi %s609_s17, %s784_s17   ;;  %s570_s16 = sphi %s607_s16, %s783_s16   ;;  %s566_s15 = sphi %s605_s15, %s782_s15  }
   0xa   : > { %s630_s21 = sadd.s32 1, %s578_s18   ;;  %s30_s22 = sadd.s32 1, %s574_s17 }
   0xb   : > { %s27_s23 = ssub.s32 %s578_s18, %s630_s21  ;;  %p37_p0 = scmp.ne.s32.totalorder %s574_s17, %s570_s16 }
   0xc   : > { %p28_p1 = scmp.eq.s32.totalorder %s27_s23, 0  ;;  %p38_p2 = scmp.eq.s32.totalorder %s578_s18, 0 }
   0xd   : > { %p43_p3 = scmp.ne.s32.totalorder %s570_s16, %s566_s15  ;;  %p44_p4 = scmp.eq.s32.totalorder %s626_s19, 0 }
   0xe   : > { %s642_s24 = scalar_select %p28_p1, %s574_s17, %s30_s22  }
   0xf   : > { %p644_p5 = por %p38_p2, %p37_p0  ;;  %p648_p6 = por %p44_p4, %p43_p3 }
  0x10   : > { %p135_p7 = scmp.eq.s32.totalorder %s626_s19, 3  ;;  %p141_p8 = scmp.eq.s32.totalorder %s380_s20, 3 }
  0x11   : > { %p412_p9 = scmp.lt.s32.totalorder %s578_s18, 4  ;;  %s663_s29 = sand.u32 1, %s574_s17  }
  0x12   : > { %p654_p10 = por %p135_p7, %p37_p0  ;;  %p658_p11 = por %p141_p8, %p43_p3 }
  0x13   : > { %s384_s30 = sshll.u32 %s578_s18, 3  ;;  %s383_s5 = sshll.u32 %s663_s29, 3 }
  0x14   : > { %s779_s0 = sld [smem:[#allocation11_spill]]  ;;  %s171_s10 = scalar_lea.vmem [#allocation2], %s383_s5 }
  0x15   : > { %s179_s11 = sshll.u32 %s171_s10, 4  ;;  %p672_p12 = pnand %p412_p9, %p644_p5  ;;  %s180_s11 = int_to_ptr.vmem [resolvable:$true] %s179_s11 }
  0x16   : > { %p387_p13 = scmp.ge.s32.totalorder %s578_s18, 1  ;;  %p203_p0 = scmp.lt.s32.totalorder %s578_s18, 5 }
  0x17   : > { %s168_s13 = scalar_lea.sflag [#allocation3], %s663_s29  ;;  %p452_p2 = pneg %p672_p12 }
  0x1a   : > { %s175_s8 = scalar_lea.hbm %s779_s0, %s384_s30  ;;  %s455_s25 = scalar_lea.hbm %s779_s0, 32 }
  0x1b   : > { %s177_s9 = sshll.u32 %s175_s8, 4  ;;  %s178_s9 = int_to_ptr.hbm [resolvable:$true] %s177_s9 }
  0x1c   : > { %s448_s14 = sshra.s32 %s178_s9, 4  ;;  %s449_s14 = int_to_ptr.hbm [resolvable:$true] %s448_s14 }
  0x1d   : > { %s450_s20 = scalar_lea.hbm %s449_s14, 8  ;;  %p456_p5 = scmp.lt.s32.totalorder %s449_s14, %s779_s0 }
  0x1e   : > { %p451_p1 = scmp.ne.s32.totalorder %s449_s14, %s450_s20  ;;  %p457_p7 = scmp.lt.s32.totalorder %s455_s25, %s450_s20 }
  0x20   : > { %p453_p3 = pnand %p452_p2, %p451_p1  ;;  %p458_p8 = por %p457_p7, %p456_p5 }
  0x22   : > { %p454_p4 = pneg %p453_p3 }
  0x24   : > { %p459_p9 = pnand %p458_p8, %p454_p4 }
  0x26   : > { %462 = shalt.err (!%p459_p9)
}
  0x27   : > { %404 = dma.hbm_to_vmem [thread:$0]  (!%p672_p12), %s178_s9, 128, %s180_s11, %s168_s13  }
  0x28   : > { %p696_p1 = pnand %p387_p13, %p203_p0  ;;  %s194_s14 = scalar_lea.hbm %s770_s1, %s384_s30 }
  0x29   : > { %s196_s20 = sshll.u32 %s194_s14, 4  ;;  %s190_s23 = scalar_lea.vmem [#allocation5], %s383_s5  ;;  %s197_s20 = int_to_ptr.hbm [resolvable:$true] %s196_s20 }
  0x2a   : > { %s198_s25 = sshll.u32 %s190_s23, 4  ;;  %s187_s6 = scalar_lea.sflag [#allocation6], %s663_s29  ;;  %s199_s25 = int_to_ptr.vmem [resolvable:$true] %s198_s25 }
  0x2b   : > { %s478_s7 = sshra.s32 %s197_s20, 4  ;;  %s485_s13 = scalar_lea.hbm %s770_s1, 32  ;;  %s479_s7 = int_to_ptr.hbm [resolvable:$true] %s478_s7 }
  0x2c   : > { %s480_s0 = scalar_lea.hbm %s479_s7, 8  ;;  %p486_p4 = scmp.lt.s32.totalorder %s479_s7, %s770_s1 }
  0x2d   : > { %p481_p3 = scmp.ne.s32.totalorder %s479_s7, %s480_s0  ;;  %p487_p5 = scmp.lt.s32.totalorder %s485_s13, %s480_s0 }
  0x2f   : > { %p483_p13 = pnand %p481_p3, %p452_p2  ;;  %p488_p7 = por %p487_p5, %p486_p4 }
  0x31   : > { %p484_p0 = pneg %p483_p13 }
  0x33   : > { %p489_p8 = pnand %p488_p7, %p484_p0 }
  0x35   : > { %492 = shalt.err (!%p489_p8)
}
  0x36   : > { %407 = dma.hbm_to_vmem [thread:$0]  (!%p672_p12), %s197_s20, 128, %s199_s25, %s187_s6  }
  0x37   : > { %207 = sbr.rel (%p696_p1) target bundleno = 189 (0xbd), region = 36  ;;  %s718_s29 = sand.u32 (!%p696_p1), 1, %s570_s16  }
  0x38   : > { %s388_s5 = sshll.u32 (!%p696_p1), %s718_s29, 3  ;;  %s210_s22 = scalar_lea.sflag (!%p696_p1), [#allocation3], %s718_s29 }
  0x39   : > { %s213_s14 = scalar_lea.vmem (!%p696_p1), [#allocation2], %s388_s5 }
  0x3c   : > { %553 = dma.done.wait (%p648_p6), %s210_s22, 128  }
  0x3d   : > { %555 = vsyncadd (%p648_p6), %s210_s22, 4294967168  ;;  %s220_s0 = scalar_lea.sflag [#allocation6], %s718_s29  ;;  %s223_s12 = scalar_lea.vmem [#allocation5], %s388_s5 }
  0x3e   : > { %557 = dma.done.wait (%p648_p6), %s220_s0, 128  }
  0x3f   : > { %559 = vsyncadd (%p648_p6), %s220_s0, 4294967168  ;;  %v254_v0 = vld [vmem:[%s223_s12] sm:$0xff]  ;;  %v446_v1 = vld [vmem:[%s771_s2] ss:$0 sm:$0xff]  ;;  %s392_s23 = sshll.u32 %s626_s19, 3  ;;  %s253_s26 = scalar_lea.vmem [#allocation7], %s388_s5 }
  0x40   : > { %v261_v2 = vmul.f32 %v446_v1, %v254_v0  ;;  %v447_v3 = vld [vmem:[%s772_s3] ss:$0 sm:$0xff]  ;;  %s282_s11 = scalar_lea.hbm %s773_s4, %s392_s23  ;;  %s284_s13 = sshll.u32 %s253_s26, 4  ;;  %s285_s13 = int_to_ptr.vmem [resolvable:$true] %s284_s13 }
  0x41   : > { %v255_v4 = vld [vmem:[%s213_s14] sm:$0xff]  ;;  %v268_v5 = vadd.f32 %v447_v3, %v254_v0  ;;  %s286_s10 = sshll.u32 %s282_s11, 4  ;;  %s272_s19 = scalar_lea.sflag [#allocation4], %s718_s29  ;;  %s287_s10 = int_to_ptr.hbm [resolvable:$true] %s286_s10 }
  0x42   : > { %262 = vadd.xlane.f32.xlu0 %v261_v2  ;;  %s522_s30 = sshra.s32 %s287_s10, 4  ;;  %s528_s12 = scalar_lea.hbm %s773_s4, 32  ;;  %s523_s30 = int_to_ptr.hbm [resolvable:$true] %s522_s30 }
  0x43   : > { %s524_s22 = scalar_lea.hbm %s523_s30, 8  ;;  %p529_p9 = scmp.lt.s32.totalorder %s523_s30, %s773_s4 }
  0x44   : > { %p525_p6 = scmp.ne.s32.totalorder %s523_s30, %s524_s22  ;;  %p530_p1 = scmp.lt.s32.totalorder %s528_s12, %s524_s22 }
  0x46   : > { %p526_p12 = pnand %p525_p6, %p654_p10  ;;  %p531_p3 = por %p530_p1, %p529_p9 }
  0x48   : > { %p527_p2 = pneg %p526_p12 }
  0x4a   : > { %p532_p13 = pnand %p531_p3, %p527_p2 }
  0xb5   : > { %v263_v6 = vpop.xlane.xlu0 %262 }
  0xb6   : > { %v264_v7 = vmul.f32 %v263_v6, %v255_v4 }
  0xb8   : > { %v269_v8 = vadd.f32 %v268_v5, %v264_v7 }
  0xba   : > { %270 = vst [vmem:[%s253_s26] sm:$0xff] %v269_v8 }
  0xbb   : > { %535 = shalt.err (!%p532_p13)
}
  0xbc   : > { %399 = dma.vmem_to_hbm [thread:$0]  (%p654_p10), %s285_s13, 128, %s287_s10, %s272_s19  }
  0xbd PF: > { %p413_p0 = scmp.ge.s32.totalorder %s578_s18, 2  ;;  %s298_s29 = sand.u32 1, %s566_s15  }
  0xbe   : > { %s299_s20 = scalar_lea.sflag [#allocation4], %s298_s29 }
  0xbf   : > { %p409_p4 = pnand %p413_p0, %p658_p11 }
  0xc1   : > { %p410_p5 = pneg %p409_p4 }
  0xc3   : > { %561 = dma.done.wait (%p410_p5), %s299_s20, 128  }
  0xc4   : > { %563 = vsyncadd (%p410_p5), %s299_s20, 4294967168  ;;  %p20_p7 = scmp.ge.s32.totalorder %s630_s21, 6   ;;  %s782_s15 = smov %s570_s16 }
  0xc5   : > { %s783_s16 = smov %s574_s17  ;;  %s784_s17 = smov %s642_s24 }
  0xc6   : > { %s785_s18 = smov %s630_s21  ;;  %22 = sbr.rel (!%p20_p7) target bundleno = 9 (0x9), region = 94 }
  0xcb   :  { %305 = vsyncpa [#allocation3], 1 }
  0xcc   :  { %307 = vsyncpa [#allocation3 + $0x1], 1 }
  0xcd   :  { %308 = vsyncpa [#allocation6], 1 }
  0xce   :  { %310 = vsyncpa [#allocation6 + $0x1], 1 }
  0xcf   :  { %311 = vsyncpa [#allocation4], 1 }
  0xd0   :  { %313 = vsyncpa [#allocation4 + $0x1], 1 }

</bundles_post_ra>
